<compile_context>
chip_gen: v7x
topology: tpu7x:2x2x1
jax: 0.10.0
libtpu: 0.0.40
codegen_flags: <defaults>
</compile_context>

<pallas_src>
import jax
import jax.numpy as jnp
from jax.experimental import pallas as pl
from jax.experimental.pallas import tpu as pltpu

NUM_CLASSES = 10
IMG_FLAT = 784                        # 1 * 28 * 28
IN_FEATURES = IMG_FLAT + NUM_CLASSES  # 794 (torch layout, only used at init)
HIDDEN = 256
MAX_TILE_B = 2048                     # batch tile; weights stay VMEM resident


def _round_up(x, m):
    return ((x + m - 1) // m) * m


def _disc_kernel(x_ref, lab_ref, w1_ref, t_ref, w2_ref, b2_ref, o_ref):
    # x_ref  : (TB, 784) f32   image tile (pipelined over batch)
    # lab_ref: (TB, 1)   int32 label column tile
    # w1_ref : (784,256) bf16  image slice of layer-1 weight   (resident)
    # t_ref  : (10, 256) bf16  embedding @ W1[784:] + b1 table (resident)
    # w2_ref : (1, 256)  f32   layer-2 weight row              (resident)
    # b2_ref : (1, 1)    f32
    # o_ref  : (TB, 1)   f32
    tb = x_ref.shape[0]

    # In-kernel f32 -> bf16 cast (no separate XLA convert pass / HBM round trip).
    x = x_ref[...].astype(jnp.bfloat16)                               # (TB, 784)
    h = jnp.dot(x, w1_ref[...], preferred_element_type=jnp.float32)   # (TB, 256)

    # One-hot built in-kernel (exact) -> bf16 MXU pass against the fused table.
    lab = lab_ref[...]                                                # (TB, 1)
    iota = jax.lax.broadcasted_iota(jnp.int32, (tb, NUM_CLASSES), 1)  # (TB, 10)
    onehot = jnp.where(iota == lab, 1.0, 0.0).astype(jnp.bfloat16)    # (TB, 10)
    h = h + jnp.dot(onehot, t_ref[...], preferred_element_type=jnp.float32)

    # LeakyReLU(0.2) in f32 on the VPU.
    h = jnp.where(h > 0, h, 0.2 * h)

    # Second layer has N=1: keep it off the MXU (VPU multiply + XLU lane reduce).
    z = jnp.sum(h * w2_ref[...], axis=-1, keepdims=True) + b2_ref[...]

    # Sigmoid: exp goes to the EUP; exact divide keeps f32 accuracy.
    o_ref[...] = 1.0 / (1.0 + jnp.exp(-z))


@jax.jit
def discriminator_forward(img, labels, prep):
    """img: (B, 1, 28, 28) float32, labels: (B,) int32 -> (B, 1) float32."""
    B = img.shape[0]
    # Glue only: flatten (matches torch .view on contiguous NCHW) and reshape
    # labels to a 2-D column. No dtype conversion passes in the wrapper.
    img_flat = img.reshape(B, IMG_FLAT)                    # f32, streamed as-is
    labels2d = labels.reshape(B, 1).astype(jnp.int32)

    # Batch tile: big enough to amortize per-step overhead, a multiple of 8,
    # and sized so the grid has >=2 steps when B allows (v7x dual-TC sharding).
    tile_b = min(MAX_TILE_B, B, max(8, _round_up(pl.cdiv(B, 2), 8)))
    grid = (pl.cdiv(B, tile_b),)

    # VMEM budget: double-buffered streamed blocks (with lane padding), resident
    # weights, the bf16 cast copy of x and the f32 hidden activation, +50%.
    vmem_bytes = (
        2 * tile_b * IMG_FLAT * 4          # x tile (f32, double-buffered)
        + 2 * tile_b * 128 * 4             # labels block, padded to 128 lanes
        + 2 * tile_b * 128 * 4             # output block, padded to 128 lanes
        + 2 * IMG_FLAT * HIDDEN * 2        # w1 (bf16)
        + 2 * 16 * HIDDEN * 2              # T (bf16, sublane-padded)
        + 2 * 8 * HIDDEN * 4               # w2 (padded)
        + 2 * 8 * 128 * 4                  # b2 (padded)
        + tile_b * IMG_FLAT * 2            # bf16 cast of the x tile
        + tile_b * HIDDEN * 4              # h (f32 intermediate / accumulator)
    )
    vmem_limit = int(min(48 * 1024 * 1024,
                         max(16 * 1024 * 1024, int(1.5 * vmem_bytes))))

    cost = pl.CostEstimate(
        flops=2 * B * (IMG_FLAT * HIDDEN + NUM_CLASSES * HIDDEN + HIDDEN),
        transcendentals=B,
        bytes_accessed=(B * IMG_FLAT * 4 + B * 4 + B * 4
                        + IMG_FLAT * HIDDEN * 2 + NUM_CLASSES * HIDDEN * 2
                        + HIDDEN * 4 + 4),
    )

    return pl.pallas_call(
        _disc_kernel,
        out_shape=jax.ShapeDtypeStruct((B, 1), jnp.float32),
        grid=grid,
        in_specs=[
            pl.BlockSpec((tile_b, IMG_FLAT), lambda i: (i, 0)),        # x tile
            pl.BlockSpec((tile_b, 1), lambda i: (i, 0)),               # labels
            pl.BlockSpec((IMG_FLAT, HIDDEN), lambda i: (0, 0)),        # w1 (resident)
            pl.BlockSpec((NUM_CLASSES, HIDDEN), lambda i: (0, 0)),     # T  (resident)
            pl.BlockSpec((1, HIDDEN), lambda i: (0, 0)),               # w2 (resident)
            pl.BlockSpec((1, 1), lambda i: (0, 0)),                    # b2
        ],
        out_specs=pl.BlockSpec((tile_b, 1), lambda i: (i, 0)),
        compiler_params=pltpu.CompilerParams(
            dimension_semantics=("parallel",),
            vmem_limit_bytes=vmem_limit,
        ),
        cost_estimate=cost,
    )(img_flat, labels2d, prep["w1_img"], prep["t"], prep["w2"], prep["b2"])


def init_params(key):
    """PyTorch-faithful parameter shapes/init (f32).

    nn.Embedding(10, 10) -> embedding (10, 10)        ~ N(0, 1)
    nn.Linear(794, 256)  -> w1 (256, 794), b1 (256,)  ~ U(-1/sqrt(794), ..)
    nn.Linear(256, 1)    -> w2 (1, 256),   b2 (1,)    ~ U(-1/sqrt(256), ..)
    """
    k_emb, k_w1, k_b1, k_w2, k_b2 = jax.random.split(key, 5)
    embedding = jax.random.normal(k_emb, (NUM_CLASSES, NUM_CLASSES), jnp.float32)
    lim1 = 1.0 / jnp.sqrt(jnp.float32(IN_FEATURES))
    w1 = jax.random.uniform(k_w1, (HIDDEN, IN_FEATURES), jnp.float32, -lim1, lim1)
    b1 = jax.random.uniform(k_b1, (HIDDEN,), jnp.float32, -lim1, lim1)
    lim2 = 1.0 / jnp.sqrt(jnp.float32(HIDDEN))
    w2 = jax.random.uniform(k_w2, (1, HIDDEN), jnp.float32, -lim2, lim2)
    b2 = jax.random.uniform(k_b2, (1,), jnp.float32, -lim2, lim2)
    return {"embedding": embedding, "w1": w1, "b1": b1, "w2": w2, "b2": b2}


def prepare_params(params):
    """One-time prep: transpose to (in, out), fuse embedding path, cast to bf16."""
    w1_t = params["w1"].T                                      # (794, 256)
    w1_img = w1_t[:IMG_FLAT].astype(jnp.bfloat16)              # (784, 256) bf16
    # T[l] = embedding[l] @ W1[784:, :] + b1  (b1 folded in exactly once).
    t = ((params["embedding"] @ w1_t[IMG_FLAT:])
         + params["b1"][None, :]).astype(jnp.bfloat16)         # (10, 256) bf16
    w2 = params["w2"].reshape(1, HIDDEN).astype(jnp.float32)   # (1, 256)
    b2 = params["b2"].reshape(1, 1).astype(jnp.float32)        # (1, 1)
    return {"w1_img": w1_img, "t": t, "w2": w2, "b2": b2}


def _reference_prepared(img, labels, prep):
    """Plain-JAX reference with the SAME dtypes/fusion as the kernel."""
    B = img.shape[0]
    x = img.reshape(B, IMG_FLAT).astype(jnp.bfloat16)
    oh = jax.nn.one_hot(labels, NUM_CLASSES, dtype=jnp.bfloat16)
    h = jnp.dot(x, prep["w1_img"], preferred_element_type=jnp.float32)
    h = h + jnp.dot(oh, prep["t"], preferred_element_type=jnp.float32)
    h = jnp.where(h > 0, h, 0.2 * h)
    z = h @ prep["w2"].T + prep["b2"]
    return 1.0 / (1.0 + jnp.exp(-z))


def _reference_f32(img, labels, params):
    """Torch-faithful all-f32 reference (concat + both Linears)."""
    B = img.shape[0]
    d_in = jnp.concatenate([img.reshape(B, -1), params["embedding"][labels]], -1)
    h = d_in @ params["w1"].T + params["b1"]
    h = jnp.where(h > 0, h, 0.2 * h)
    return jax.nn.sigmoid(h @ params["w2"].T + params["b2"])


if __name__ == "__main__":
    key = jax.random.PRNGKey(0)
    k_params, k_img, k_lab = jax.random.split(key, 3)

    B = 16  # small test batch; tile_b=8 -> 2 grid steps (exercises the pipeline)
    params = init_params(k_params)
    prep = prepare_params(params)
    img = jax.random.normal(k_img, (B, 1, 28, 28), jnp.float32)      # NCHW
    labels = jax.random.randint(k_lab, (B,), 0, NUM_CLASSES, jnp.int32)

    out = jax.block_until_ready(discriminator_forward(img, labels, prep))
    assert out.shape == (B, 1), out.shape

    # Tight check vs. a reference using the identical bf16 weights/activations.
    ref_bf16 = jax.block_until_ready(_reference_prepared(img, labels, prep))
    assert jnp.allclose(out, ref_bf16, atol=2e-4, rtol=2e-4), \
        "mismatch vs bf16-matched JAX reference"

    # Loose check vs. the torch-faithful f32 reference (bf16 weight quantization).
    ref_f32 = jax.block_until_ready(_reference_f32(img, labels, params))
    assert jnp.allclose(out, ref_f32, atol=5e-2), \
        "mismatch vs f32 torch-faithful reference"

    print("KERNEL_OK")
</pallas_src>

<mosaic_0001>
module attributes {stable_mosaic.version = 11 : i64} {
  func.func @_disc_kernel(%arg0: i32, %arg1: memref<8x784xf32, #tpu.memory_space<vmem>>, %arg2: memref<8x1xi32, #tpu.memory_space<vmem>>, %arg3: memref<784x256xbf16, #tpu.memory_space<vmem>>, %arg4: memref<10x256xbf16, #tpu.memory_space<vmem>>, %arg5: memref<1x256xf32, #tpu.memory_space<vmem>>, %arg6: memref<1x1xf32, #tpu.memory_space<vmem>>, %arg7: memref<8x1xf32, #tpu.memory_space<vmem>>) attributes {dimension_semantics = [#tpu.dimension_semantics<parallel>], iteration_bounds = array<i64: 2>, scalar_prefetch = 0 : i64, scratch_operands = 0 : i64, tpu.core_type = #tpu.core_type<tc>, window_params = [{transform_indices = @transform_0, window_bounds = array<i64: 8, 784>}, {transform_indices = @transform_1, window_bounds = array<i64: 8, 1>}, {pipeline_mode = #tpu.pipeline_mode<synchronous>, transform_indices = @transform_2, window_bounds = array<i64: 784, 256>}, {pipeline_mode = #tpu.pipeline_mode<synchronous>, transform_indices = @transform_3, window_bounds = array<i64: 10, 256>}, {pipeline_mode = #tpu.pipeline_mode<synchronous>, transform_indices = @transform_4, window_bounds = array<i64: 1, 256>}, {pipeline_mode = #tpu.pipeline_mode<synchronous>, transform_indices = @transform_5, window_bounds = array<i64: 1, 1>}, {transform_indices = @transform_6, window_bounds = array<i64: 8, 1>}]} {
    %c0 = arith.constant 0 : index
    %c0_0 = arith.constant 0 : index
    %0 = vector.load %arg1[%c0, %c0_0] : memref<8x784xf32, #tpu.memory_space<vmem>>, vector<8x784xf32>
    %1 = arith.truncf %0 : vector<8x784xf32> to vector<8x784xbf16>
    %c0_1 = arith.constant 0 : index
    %c0_2 = arith.constant 0 : index
    %2 = vector.load %arg3[%c0_1, %c0_2] : memref<784x256xbf16, #tpu.memory_space<vmem>>, vector<784x256xbf16>
    %cst = arith.constant dense<0.000000e+00> : vector<8x256xf32>
    %3 = tpu.matmul %1, %2, %cst {dimension_numbers = #tpu.dot_dimension_numbers<[1], [0], [0], [1], [0, 0, 1, 1], [], []>} : vector<8x784xbf16>, vector<784x256xbf16>, vector<8x256xf32> -> vector<8x256xf32>
    %c0_3 = arith.constant 0 : index
    %c0_4 = arith.constant 0 : index
    %4 = vector.load %arg2[%c0_3, %c0_4] : memref<8x1xi32, #tpu.memory_space<vmem>>, vector<8x1xi32>
    %5 = tpu.iota {dimensions = array<i32: 1>} : vector<8x10xi32>
    %6 = vector.broadcast %4 : vector<8x1xi32> to vector<8x10xi32>
    %7 = arith.cmpi eq, %5, %6 : vector<8x10xi32>
    %cst_5 = arith.constant 1.000000e+00 : f32
    %cst_6 = arith.constant 0.000000e+00 : f32
    %8 = vector.broadcast %cst_5 : f32 to vector<8x10xf32>
    %9 = vector.broadcast %cst_6 : f32 to vector<8x10xf32>
    %10 = arith.select %7, %8, %9 : vector<8x10xi1>, vector<8x10xf32>
    %11 = arith.truncf %10 : vector<8x10xf32> to vector<8x10xbf16>
    %c0_7 = arith.constant 0 : index
    %c0_8 = arith.constant 0 : index
    %12 = vector.load %arg4[%c0_7, %c0_8] : memref<10x256xbf16, #tpu.memory_space<vmem>>, vector<10x256xbf16>
    %cst_9 = arith.constant dense<0.000000e+00> : vector<8x256xf32>
    %13 = tpu.matmul %11, %12, %cst_9 {dimension_numbers = #tpu.dot_dimension_numbers<[1], [0], [0], [1], [0, 0, 1, 1], [], []>} : vector<8x10xbf16>, vector<10x256xbf16>, vector<8x256xf32> -> vector<8x256xf32>
    %14 = arith.addf %3, %13 : vector<8x256xf32>
    %cst_10 = arith.constant 0.000000e+00 : f32
    %15 = vector.broadcast %cst_10 : f32 to vector<8x256xf32>
    %16 = arith.cmpf ogt, %14, %15 : vector<8x256xf32>
    %cst_11 = arith.constant 2.000000e-01 : f32
    %17 = vector.broadcast %cst_11 : f32 to vector<8x256xf32>
    %18 = arith.mulf %17, %14 : vector<8x256xf32>
    %19 = arith.select %16, %14, %18 : vector<8x256xi1>, vector<8x256xf32>
    %c0_12 = arith.constant 0 : index
    %c0_13 = arith.constant 0 : index
    %20 = vector.load %arg5[%c0_12, %c0_13] : memref<1x256xf32, #tpu.memory_space<vmem>>, vector<1x256xf32>
    %21 = vector.broadcast %20 : vector<1x256xf32> to vector<8x256xf32>
    %22 = arith.mulf %19, %21 : vector<8x256xf32>
    %cst_14 = arith.constant dense<0.000000e+00> : vector<8xf32>
    %23 = vector.multi_reduction <add>, %22, %cst_14 [1] : vector<8x256xf32> to vector<8xf32>
    %24 = vector.shape_cast %23 : vector<8xf32> to vector<8x1xf32>
    %c0_15 = arith.constant 0 : index
    %c0_16 = arith.constant 0 : index
    %25 = vector.load %arg6[%c0_15, %c0_16] : memref<1x1xf32, #tpu.memory_space<vmem>>, vector<1x1xf32>
    %26 = vector.broadcast %25 : vector<1x1xf32> to vector<8x1xf32>
    %27 = arith.addf %24, %26 : vector<8x1xf32>
    %cst_17 = arith.constant 0.000000e+00 : f32
    %28 = vector.broadcast %cst_17 : f32 to vector<8x1xf32>
    %29 = arith.subf %28, %27 : vector<8x1xf32>
    %30 = math.exp %29 : vector<8x1xf32>
    %cst_18 = arith.constant 1.000000e+00 : f32
    %31 = vector.broadcast %cst_18 : f32 to vector<8x1xf32>
    %32 = arith.addf %31, %30 : vector<8x1xf32>
    %cst_19 = arith.constant 1.000000e+00 : f32
    %33 = vector.broadcast %cst_19 : f32 to vector<8x1xf32>
    %34 = arith.divf %33, %32 : vector<8x1xf32>
    %c0_20 = arith.constant 0 : index
    %c0_21 = arith.constant 0 : index
    %35 = vector.load %arg7[%c0_20, %c0_21] : memref<8x1xf32, #tpu.memory_space<vmem>>, vector<8x1xf32>
    tpu.vector_store %arg7[%c0_20, %c0_21], %34 {strides = array<i32>} : memref<8x1xf32, #tpu.memory_space<vmem>>, vector<8x1xf32>,
    return
  }
  func.func @transform_0(%arg0: i32) -> (i32, i32) {
    %c0_i32 = arith.constant 0 : i32
    %c0_i32_0 = arith.constant 0 : i32
    return %arg0, %c0_i32 : i32, i32
  }
  func.func @transform_1(%arg0: i32) -> (i32, i32) {
    %c0_i32 = arith.constant 0 : i32
    %c0_i32_0 = arith.constant 0 : i32
    return %arg0, %c0_i32 : i32, i32
  }
  func.func @transform_2(%arg0: i32) -> (i32, i32) {
    %c0_i32 = arith.constant 0 : i32
    %c0_i32_0 = arith.constant 0 : i32
    %c0_i32_1 = arith.constant 0 : i32
    return %c0_i32, %c0_i32_0 : i32, i32
  }
  func.func @transform_3(%arg0: i32) -> (i32, i32) {
    %c0_i32 = arith.constant 0 : i32
    %c0_i32_0 = arith.constant 0 : i32
    %c0_i32_1 = arith.constant 0 : i32
    return %c0_i32, %c0_i32_0 : i32, i32
  }
  func.func @transform_4(%arg0: i32) -> (i32, i32) {
    %c0_i32 = arith.constant 0 : i32
    %c0_i32_0 = arith.constant 0 : i32
    %c0_i32_1 = arith.constant 0 : i32
    return %c0_i32, %c0_i32_0 : i32, i32
  }
  func.func @transform_5(%arg0: i32) -> (i32, i32) {
    %c0_i32 = arith.constant 0 : i32
    %c0_i32_0 = arith.constant 0 : i32
    %c0_i32_1 = arith.constant 0 : i32
    return %c0_i32, %c0_i32_0 : i32, i32
  }
  func.func @transform_6(%arg0: i32) -> (i32, i32) {
    %c0_i32 = arith.constant 0 : i32
    %c0_i32_0 = arith.constant 0 : i32
    return %arg0, %c0_i32 : i32, i32
  }
}

</mosaic_0001>

<bundles_post_ra>
// kernel: discriminator_forward.1
= control target key start
LH: loop header
LB: loop body
LE: loop exit
PB: predicated region body
PF: predicated region fallthrough
CT: control target
= control target key end

     0   :  { %s1555_s23 = smov 0   ;;  %s1900_s0 = inlined_call_operand.vmem [shape: f32[16,784], index: 0, kind: input, shape index: {}]   ;;  %s1901_s1 = inlined_call_operand.vmem [shape: s32[16,1], index: 1, kind: input, shape index: {}]   ;;  %s1902_s2 = inlined_call_operand.vmem [shape: bf16[784,256], index: 2, kind: input, shape index: {}]   ;;  %s1903_s3 = inlined_call_operand.vmem [shape: bf16[10,256], index: 3, kind: input, shape index: {}]   ;;  %s1904_s4 = inlined_call_operand.vmem [shape: f32[1,256], index: 4, kind: input, shape index: {}]   ;;  %s1905_s5 = inlined_call_operand.<no memory space> [shape: f32[1,1], index: 5, kind: input, shape index: {}]   ;;  %s1906_s6 = inlined_call_operand.vmem [shape: f32[16,1], index: 6, kind: output, shape index: {}]  }
   0x1   :  { %v11_v0 = vstv %s1905_s5 }
   0x2   :  { %12 = vst [vmem:[#allocation2] sm:$0x1] %v11_v0 }
   0x3 LB: > { %s1215_s24 = sadd.s32 4294967295, %s1513_s23   ;;  %p1219_p0 = scmp.ge.s32.totalorder %s1513_s23, 1  ;;  %s1513_s23 = sphi %s1555_s23, %s18_s23  }
   0x4   : > { %p223_p1 = scmp.lt.s32.totalorder %s1513_s23, 3 }
   0x6   : > { %p224_p2 = pnand %p1219_p0, %p223_p1 }
   0x7   : > { %p256_p3 = scmp.lt.s32.totalorder (!%p224_p2), %s1215_s24, 1  ;;  %v1353_v1 = vld [vmem:[%s1902_s2 + $0x4] ss:$8 sps:$4 sm:$0xff] (!%p224_p2)   ;;  %v1515_v2 = vmov (!%p224_p2), 0   ;;  %v1355_v3 = vld [vmem:[%s1902_s2] ss:$8 sps:$4 sm:$0xff] (!%p224_p2)  }
   0x8   : > { %227 = sbr.rel (%p224_p2) target bundleno = 622 (0x26e), region = 44  ;;  %1352 = vset.pattern.permute.xlu0 (!%p224_p2), %v1515_v2  ;;  %444 = vmatprep.mubr.bf16.mxu0 (!%p224_p2), %v1515_v2  ;;  %v1356_v4 = vld [vmem:[%s1902_s2 + $0x14] ss:$8 sps:$4 sm:$0xff] (!%p224_p2)   ;;  %v1358_v5 = vld [vmem:[%s1902_s2 + $0x10] ss:$8 sps:$4 sm:$0xff] (!%p224_p2)   ;;  %vm405_vm0 = vcmask (!%p224_p2), 1044480  }
   0x9   : > { %947 = vmatprep.subr.bf16.mxu1 (!%p224_p2), %v1353_v1  ;;  %v1359_v6 = vld [vmem:[%s1902_s2 + $0x24] ss:$8 sps:$4 sm:$0xff] (!%p224_p2)   ;;  %v1361_v8 = vld [vmem:[%s1902_s2 + $0x20] ss:$8 sps:$4 sm:$0xff] (!%p224_p2)   ;;  %v1362_v9 = vld [vmem:[%s1902_s2 + $0x34] ss:$8 sps:$4 sm:$0xff] (!%p224_p2)  }
   0xa   : > { %948 = vmatpush1.bf16.msra.mxu1 (!%p224_p2), %v1355_v3  ;;  %v1364_v10 = vld [vmem:[%s1902_s2 + $0x30] ss:$8 sps:$4 sm:$0xff] (!%p224_p2)   ;;  %v1365_v11 = vld [vmem:[%s1902_s2 + $0x44] ss:$8 sps:$4 sm:$0xff] (!%p224_p2)   ;;  %v1367_v12 = vld [vmem:[%s1902_s2 + $0x40] ss:$8 sps:$4 sm:$0xff] (!%p224_p2)  }
   0xb   : > { %949 = vmatprep.subr.bf16.mxu1 (!%p224_p2), %v1356_v4  ;;  %v1368_v13 = vld [vmem:[%s1902_s2 + $0x54] ss:$8 sps:$4 sm:$0xff] (!%p224_p2)   ;;  %v1370_v14 = vld [vmem:[%s1902_s2 + $0x50] ss:$8 sps:$4 sm:$0xff] (!%p224_p2)   ;;  %v1371_v15 = vld [vmem:[%s1902_s2 + $0x64] ss:$8 sps:$4 sm:$0xff] (!%p224_p2)  }
   0xc   : > { %v1373_v18 = vld [vmem:[%s1902_s2 + $0x60] ss:$8 sps:$4 sm:$0xff] (!%p224_p2)   ;;  %v1374_v19 = vld [vmem:[%s1902_s2 + $0x74] ss:$8 sps:$4 sm:$0xff] (!%p224_p2)   ;;  %v1376_v20 = vld [vmem:[%s1902_s2 + $0x70] ss:$8 sps:$4 sm:$0xff] (!%p224_p2)  }
   0xd   : > { %v1377_v21 = vld [vmem:[%s1902_s2 + $0x84] ss:$8 sps:$4 sm:$0xff] (!%p224_p2)   ;;  %v1379_v22 = vld [vmem:[%s1902_s2 + $0x80] ss:$8 sps:$4 sm:$0xff] (!%p224_p2)   ;;  %v1380_v23 = vld [vmem:[%s1902_s2 + $0x94] ss:$8 sps:$4 sm:$0xff] (!%p224_p2)  }
   0xe   : > { %950 = vmatpush1.bf16.msra.mxu1 (!%p224_p2), %v1358_v5  ;;  %v1382_v24 = vld [vmem:[%s1902_s2 + $0x90] ss:$8 sps:$4 sm:$0xff] (!%p224_p2)   ;;  %v1383_v25 = vld [vmem:[%s1902_s2 + $0xa4] ss:$8 sps:$4 sm:$0xff] (!%p224_p2)   ;;  %v1385_v26 = vld [vmem:[%s1902_s2 + $0xa0] ss:$8 sps:$4 sm:$0xff] (!%p224_p2)  }
   0xf   : > { %s1908_s24 = smov (!%p256_p3, %s1215_s24), 1  ;;  %951 = vmatprep.subr.bf16.mxu1 %v1359_v6  ;;  %v1386_v27 = vld [vmem:[%s1902_s2 + $0xb4] ss:$8 sps:$4 sm:$0xff]   ;;  %v1388_v28 = vld [vmem:[%s1902_s2 + $0xb0] ss:$8 sps:$4 sm:$0xff]   ;;  %vm401_vm2 = vcmask 80896  }
  0x10   : > { %s1221_s8 = sshll.u32 %s1908_s24, 3  ;;  %s1341_s22 = smul.u32 56, %s1908_s24  ;;  %v1446_v29 = vld [vmem:[%s1903_s3 + $0x4] ss:$8 sps:$4 sm:$0x1f]   ;;  %vm943_vm3 = vcmask 130048  }
  0x11   : > { %s264_s13 = scalar_lea.vmem %s1901_s1, %s1221_s8  ;;  %v1448_v30 = vld [vmem:[%s1903_s3] ss:$8 sps:$4 sm:$0x1f]   ;;  %v1389_v31 = vld [vmem:[%s1902_s2 + $0xc4] ss:$8 sps:$4 sm:$0xff]   ;;  %1225 = vmatprep.subr.msk.bf16.mxu0 %vm405_vm0, %v1446_v29  ;;  %s268_s21 = scalar_lea.vmem %s1906_s6, %s1221_s8  ;;  %vm1148_vm6 = vcmask 7168  }
  0x12   : > { %v382_v7 = vld [vmem:[%s264_s13] sm:$0xff]  ;;  %952 = vmatpush1.bf16.msra.mxu1 %v1361_v8  ;;  %s1610_s30 = scalar_lea.vmem %s1900_s0, %s1341_s22  ;;  %v407_v32 = vsel %vm405_vm0, %v1448_v30, 0  ;;  %v1392_v35 = vld [vmem:[%s1902_s2 + $0xd4] ss:$8 sps:$4 sm:$0xff]   ;;  %v1394_v36 = vld [vmem:[%s1902_s2 + $0xd0] ss:$8 sps:$4 sm:$0xff]  }
  0x13   : > { %386 = vperm.xlu0 %1352, %v382_v7   ;;  %953 = vmatprep.subr.bf16.mxu1 %v1362_v9  ;;  %v271_v16 = vld [vmem:[%s1610_s30 + $0x8] sm:$0xff]  ;;  %v1398_v39 = vld [vmem:[%s1902_s2 + $0xf4] ss:$8 sps:$4 sm:$0xff]   ;;  %v1400_v40 = vld [vmem:[%s1902_s2 + $0xf0] ss:$8 sps:$4 sm:$0xff]  }
  0x14   : > { %v278_v17 = vpack.c.bf16 %v271_v16, %v271_v16  ;;  %413 = vmatpush1.bf16.msra.mxu0 %v407_v32  ;;  %v1454_v33 = vld [vmem:[%s1902_s2 + $0x204] ss:$8 sps:$4 sm:$0xff]   ;;  %v1391_v34 = vld [vmem:[%s1902_s2 + $0xc0] ss:$8 sps:$4 sm:$0xff]   ;;  %v273_v43 = vld [vmem:[%s1610_s30 + $0x18] sm:$0xff]  ;;  %v383_v16 = vlaneseq }
  0x15   : > { %1029 = vmatprep.subr.bf16.mxu0 %v1454_v33  ;;  %v1395_v37 = vld [vmem:[%s1902_s2 + $0xe4] ss:$8 sps:$4 sm:$0xff]   ;;  %v1397_v38 = vld [vmem:[%s1902_s2 + $0xe0] ss:$8 sps:$4 sm:$0xff]   ;;  %v280_v46 = vpack.c.bf16 %v273_v43, %v273_v43  ;;  %v1406_v47 = vld [vmem:[%s1902_s2 + $0x114] ss:$8 sps:$4 sm:$0xff]  }
  0x16   : > { %954 = vmatpush1.bf16.msra.mxu1 %v1364_v10  ;;  %979 = vmatprep.mubr.bf16.mxu1 %v278_v17  ;;  %v270_v41 = vld [vmem:[%s1610_s30] sm:$0xff]  ;;  %v1404_v48 = vld [vmem:[%s1902_s2 + $0x110] ss:$8 sps:$4 sm:$0xff]   ;;  %v1412_v51 = vld [vmem:[%s1902_s2 + $0x134] ss:$8 sps:$4 sm:$0xff]   ;;  %v384_v17 = vand.u32 127, %v383_v16 }
  0x17   : > { %955 = vmatprep.subr.bf16.mxu1 %v1365_v11  ;;  %v1403_v42 = vld [vmem:[%s1902_s2 + $0x104] ss:$8 sps:$4 sm:$0xff]   ;;  %v277_v44 = vpack.c.bf16 %v270_v41, %v270_v41  ;;  %v1401_v45 = vld [vmem:[%s1902_s2 + $0x100] ss:$8 sps:$4 sm:$0xff]   ;;  %v1410_v52 = vld [vmem:[%s1902_s2 + $0x130] ss:$8 sps:$4 sm:$0xff]  }
  0x18   : > { %v1409_v49 = vld [vmem:[%s1902_s2 + $0x124] ss:$8 sps:$4 sm:$0xff]   ;;  %v1407_v50 = vld [vmem:[%s1902_s2 + $0x120] ss:$8 sps:$4 sm:$0xff]   ;;  %v1418_v55 = vld [vmem:[%s1902_s2 + $0x154] ss:$8 sps:$4 sm:$0xff]  }
  0x19   : > { %v1415_v53 = vld [vmem:[%s1902_s2 + $0x144] ss:$8 sps:$4 sm:$0xff]   ;;  %v1413_v54 = vld [vmem:[%s1902_s2 + $0x140] ss:$8 sps:$4 sm:$0xff]   ;;  %v1416_v56 = vld [vmem:[%s1902_s2 + $0x150] ss:$8 sps:$4 sm:$0xff]  }
  0x1a   : > { %956 = vmatpush1.bf16.msra.mxu1 %v1367_v12  ;;  %v1421_v57 = vld [vmem:[%s1902_s2 + $0x164] ss:$8 sps:$4 sm:$0xff]   ;;  %v1419_v58 = vld [vmem:[%s1902_s2 + $0x160] ss:$8 sps:$4 sm:$0xff]   ;;  %v1424_v59 = vld [vmem:[%s1902_s2 + $0x174] ss:$8 sps:$4 sm:$0xff]  }
  0x1b   : > { %957 = vmatprep.subr.bf16.mxu1 %v1368_v13  ;;  %v1422_v60 = vld [vmem:[%s1902_s2 + $0x170] ss:$8 sps:$4 sm:$0xff]   ;;  %v1427_v61 = vld [vmem:[%s1902_s2 + $0x184] ss:$8 sps:$4 sm:$0xff]   ;;  %v1425_v62 = vld [vmem:[%s1902_s2 + $0x180] ss:$8 sps:$4 sm:$0xff]  }
  0x1c   : > { %v1430_v63 = vld [vmem:[%s1902_s2 + $0x194] ss:$8 sps:$4 sm:$0xff]   ;;  %v1428_v0 = vld [vmem:[%s1902_s2 + $0x190] ss:$8 sps:$4 sm:$0xff]   ;;  %v1433_v1 = vld [vmem:[%s1902_s2 + $0x1a4] ss:$8 sps:$4 sm:$0xff]  }
  0x1d   : > { %v1431_v3 = vld [vmem:[%s1902_s2 + $0x1a0] ss:$8 sps:$4 sm:$0xff]   ;;  %v1436_v4 = vld [vmem:[%s1902_s2 + $0x1b4] ss:$8 sps:$4 sm:$0xff]   ;;  %v1434_v5 = vld [vmem:[%s1902_s2 + $0x1b0] ss:$8 sps:$4 sm:$0xff]  }
  0x1e   : > { %958 = vmatpush1.bf16.msra.mxu1 %v1370_v14  ;;  %v1439_v6 = vld [vmem:[%s1902_s2 + $0x1c4] ss:$8 sps:$4 sm:$0xff]   ;;  %v1437_v7 = vld [vmem:[%s1902_s2 + $0x1c0] ss:$8 sps:$4 sm:$0xff]   ;;  %v1442_v8 = vld [vmem:[%s1902_s2 + $0x1d4] ss:$8 sps:$4 sm:$0xff]  }
  0x1f   : > { %959 = vmatprep.subr.bf16.mxu1 %v1371_v15  ;;  %v1440_v9 = vld [vmem:[%s1902_s2 + $0x1d0] ss:$8 sps:$4 sm:$0xff]   ;;  %v1445_v10 = vld [vmem:[%s1902_s2 + $0x1e4] ss:$8 sps:$4 sm:$0xff]   ;;  %v1443_v11 = vld [vmem:[%s1902_s2 + $0x1e0] ss:$8 sps:$4 sm:$0xff]  }
  0x20   : > { %v1451_v12 = vld [vmem:[%s1902_s2 + $0x1f4] ss:$8 sps:$4 sm:$0xff]   ;;  %v1449_v13 = vld [vmem:[%s1902_s2 + $0x1f0] ss:$8 sps:$4 sm:$0xff]   ;;  %v1464_v32 = vld [vmem:[%s1902_s2 + $0x240] ss:$8 sps:$4 sm:$0xff]  }
  0x21   : > { %v272_v14 = vld [vmem:[%s1610_s30 + $0x10] sm:$0xff]  ;;  %v1484_v43 = vld [vmem:[%s1902_s2 + $0x2a4] ss:$8 sps:$4 sm:$0xff]  }
  0x22   : > { %960 = vmatpush1.bf16.msra.mxu1 %v1373_v18  ;;  %v279_v15 = vpack.c.bf16 %v272_v14, %v272_v14  ;;  %v275_v18 = vld [vmem:[%s1610_s30 + $0x28] sm:$0xff]  ;;  %v1463_v29 = vld [vmem:[%s1902_s2 + $0x234] ss:$8 sps:$4 sm:$0xff]   ;;  %v1461_v30 = vld [vmem:[%s1902_s2 + $0x230] ss:$8 sps:$4 sm:$0xff]  }
  0x23   : > { %961 = vmatprep.subr.bf16.mxu1 %v1374_v19  ;;  %v1469_v33 = vld [vmem:[%s1902_s2 + $0x254] ss:$8 sps:$4 sm:$0xff]  }
  0x24   : > { %v1481_v41 = vld [vmem:[%s1902_s2 + $0x294] ss:$8 sps:$4 sm:$0xff]  }
  0x26   : > { %962 = vmatpush1.bf16.msra.mxu1 %v1376_v20  ;;  %v1516_v20 = vmov 0.0  }
  0x27   : > { %963 = vmatprep.subr.bf16.mxu1 %v1377_v21 }
  0x2a   : > { %964 = vmatpush1.bf16.msra.mxu1 %v1379_v22  ;;  %v1452_v22 = vld [vmem:[%s1902_s2 + $0x200] ss:$8 sps:$4 sm:$0xff]  }
  0x2b   : > { %965 = vmatprep.subr.bf16.mxu1 %v1380_v23  ;;  %v282_v23 = vpack.c.bf16 %v275_v18, %v275_v18 }
  0x2e   : > { %966 = vmatpush1.bf16.msra.mxu1 %v1382_v24 }
  0x2f   : > { %967 = vmatprep.subr.bf16.mxu1 %v1383_v25  ;;  %v1457_v25 = vld [vmem:[%s1902_s2 + $0x214] ss:$8 sps:$4 sm:$0xff]  }
  0x32   : > { %968 = vmatpush1.bf16.msra.mxu1 %v1385_v26  ;;  %v1455_v26 = vld [vmem:[%s1902_s2 + $0x210] ss:$8 sps:$4 sm:$0xff]  }
  0x33   : > { %969 = vmatprep.subr.bf16.mxu1 %v1386_v27  ;;  %v1460_v27 = vld [vmem:[%s1902_s2 + $0x224] ss:$8 sps:$4 sm:$0xff]  }
  0x36   : > { %970 = vmatpush1.bf16.msra.mxu1 %v1388_v28  ;;  %v1458_v28 = vld [vmem:[%s1902_s2 + $0x220] ss:$8 sps:$4 sm:$0xff]  }
  0x37   : > { %971 = vmatprep.subr.bf16.mxu1 %v1389_v31  ;;  %v1466_v31 = vld [vmem:[%s1902_s2 + $0x244] ss:$8 sps:$4 sm:$0xff]  }
  0x3a   : > { %972 = vmatpush1.bf16.msra.mxu1 %v1391_v34  ;;  %v1467_v34 = vld [vmem:[%s1902_s2 + $0x250] ss:$8 sps:$4 sm:$0xff]  }
  0x3b   : > { %973 = vmatprep.subr.bf16.mxu1 %v1392_v35  ;;  %v1472_v35 = vld [vmem:[%s1902_s2 + $0x264] ss:$8 sps:$4 sm:$0xff]  }
  0x3e   : > { %974 = vmatpush1.bf16.msra.mxu1 %v1394_v36  ;;  %v1470_v36 = vld [vmem:[%s1902_s2 + $0x260] ss:$8 sps:$4 sm:$0xff]  }
  0x3f   : > { %975 = vmatprep.subr.bf16.mxu1 %v1395_v37  ;;  %v1475_v37 = vld [vmem:[%s1902_s2 + $0x274] ss:$8 sps:$4 sm:$0xff]  }
  0x42   : > { %976 = vmatpush1.bf16.msra.mxu1 %v1397_v38  ;;  %v1473_v38 = vld [vmem:[%s1902_s2 + $0x270] ss:$8 sps:$4 sm:$0xff]  }
  0x43   : > { %977 = vmatprep.subr.bf16.mxu1 %v1398_v39  ;;  %v1478_v39 = vld [vmem:[%s1902_s2 + $0x284] ss:$8 sps:$4 sm:$0xff]  }
  0x46   : > { %978 = vmatpush1.bf16.msra.mxu1 %v1400_v40  ;;  %v1476_v40 = vld [vmem:[%s1902_s2 + $0x280] ss:$8 sps:$4 sm:$0xff]  }
  0x47   : > { %988 = vmatprep.subr.bf16.mxu1 %v1403_v42  ;;  %v1479_v42 = vld [vmem:[%s1902_s2 + $0x290] ss:$8 sps:$4 sm:$0xff]  }
  0x49   : > { %980 = vmatmul.mubr.bf16.vlgmr.msra.gmra.mrb[0].mxu1 %v277_v44  ;;  %v1482_v44 = vld [vmem:[%s1902_s2 + $0x2a0] ss:$8 sps:$4 sm:$0xff]  }
  0x4a   : > { %989 = vmatpush1.bf16.msra.mxu1 %v1401_v45  ;;  %1020 = vmatprep.mubr.bf16.mxu1 %v280_v46  ;;  %v1487_v45 = vld [vmem:[%s1902_s2 + $0x2b4] ss:$8 sps:$4 sm:$0xff]   ;;  %v1485_v46 = vld [vmem:[%s1902_s2 + $0x2b0] ss:$8 sps:$4 sm:$0xff]  }
  0x4b   : > { %990 = vmatprep.subr.bf16.mxu1 %v1406_v47  ;;  %v1490_v47 = vld [vmem:[%s1902_s2 + $0x2c4] ss:$8 sps:$4 sm:$0xff]  }
  0x4e   : > { %991 = vmatpush1.bf16.msra.mxu1 %v1404_v48  ;;  %v1488_v48 = vld [vmem:[%s1902_s2 + $0x2c0] ss:$8 sps:$4 sm:$0xff]  }
  0x4f   : > { %992 = vmatprep.subr.bf16.mxu1 %v1409_v49  ;;  %v1493_v49 = vld [vmem:[%s1902_s2 + $0x2d4] ss:$8 sps:$4 sm:$0xff]  }
  0x52   : > { %993 = vmatpush1.bf16.msra.mxu1 %v1407_v50  ;;  %v1491_v50 = vld [vmem:[%s1902_s2 + $0x2d0] ss:$8 sps:$4 sm:$0xff]  }
  0x53   : > { %994 = vmatprep.subr.bf16.mxu1 %v1412_v51  ;;  %v1496_v51 = vld [vmem:[%s1902_s2 + $0x2e4] ss:$8 sps:$4 sm:$0xff]  }
  0x56   : > { %995 = vmatpush1.bf16.msra.mxu1 %v1410_v52  ;;  %v1494_v52 = vld [vmem:[%s1902_s2 + $0x2e0] ss:$8 sps:$4 sm:$0xff]  }
  0x57   : > { %996 = vmatprep.subr.bf16.mxu1 %v1415_v53  ;;  %v1499_v53 = vld [vmem:[%s1902_s2 + $0x2f4] ss:$8 sps:$4 sm:$0xff]  }
  0x5a   : > { %997 = vmatpush1.bf16.msra.mxu1 %v1413_v54  ;;  %v1497_v54 = vld [vmem:[%s1902_s2 + $0x2f0] ss:$8 sps:$4 sm:$0xff]  }
  0x5b   : > { %998 = vmatprep.subr.bf16.mxu1 %v1418_v55  ;;  %v274_v55 = vld [vmem:[%s1610_s30 + $0x20] sm:$0xff] }
  0x5e   : > { %999 = vmatpush1.bf16.msra.mxu1 %v1416_v56  ;;  %v1502_v56 = vld [vmem:[%s1902_s2 + $0x304] ss:$8 sps:$4 sm:$0xff]  }
  0x5f   : > { %1000 = vmatprep.subr.bf16.mxu1 %v1421_v57  ;;  %v281_v57 = vpack.c.bf16 %v274_v55, %v274_v55 }
  0x62   : > { %1001 = vmatpush1.bf16.msra.mxu1 %v1419_v58  ;;  %v1500_v58 = vld [vmem:[%s1902_s2 + $0x300] ss:$8 sps:$4 sm:$0xff]  }
  0x63   : > { %1002 = vmatprep.subr.bf16.mxu1 %v1424_v59  ;;  %v276_v59 = vld [vmem:[%s1610_s30 + $0x30] sm:$0xff] }
  0x66   : > { %1003 = vmatpush1.bf16.msra.mxu1 %v1422_v60  ;;  %v283_v60 = vpack.c.bf16 %v276_v59, %v276_v59 }
  0x67   : > { %1004 = vmatprep.subr.bf16.mxu1 %v1427_v61 }
  0x6a   : > { %1005 = vmatpush1.bf16.msra.mxu1 %v1425_v62 }
  0x6b   : > { %1006 = vmatprep.subr.bf16.mxu1 %v1430_v63 }
  0x6e   : > { %1007 = vmatpush1.bf16.msra.mxu1 %v1428_v0 }
  0x6f   : > { %1008 = vmatprep.subr.bf16.mxu1 %v1433_v1 }
  0x72   : > { %1009 = vmatpush1.bf16.msra.mxu1 %v1431_v3 }
  0x73   : > { %1010 = vmatprep.subr.bf16.mxu1 %v1436_v4 }
  0x76   : > { %1011 = vmatpush1.bf16.msra.mxu1 %v1434_v5 }
  0x77   : > { %1012 = vmatprep.subr.bf16.mxu1 %v1439_v6 }
  0x7a   : > { %1013 = vmatpush1.bf16.msra.mxu1 %v1437_v7 }
  0x7b   : > { %1014 = vmatprep.subr.bf16.mxu1 %v1442_v8  ;;  %v1120_v8 = vshrl.u32 %v383_v16, 7 }
  0x7e   : > { %1015 = vmatpush1.bf16.msra.mxu1 %v1440_v9  ;;  %v1121_v9 = vsub.s32 0, %v1120_v8 }
  0x7f   : > { %1016 = vmatprep.subr.bf16.mxu1 %v1445_v10  ;;  %v1125_v10 = vsub.s32 1, %v1120_v8 }
  0x82   : > { %1017 = vmatpush1.bf16.msra.mxu1 %v1443_v11 }
  0x83   : > { %1018 = vmatprep.subr.bf16.mxu1 %v1451_v12 }
  0x86   : > { %1019 = vmatpush1.bf16.msra.mxu1 %v1449_v13 }
  0x89   : > { %1021 = vmatmul.mubr.bf16.vlgmr.msra.gmra.mrb[0].mxu1 %v279_v15 }
  0x92   : > { %v387_v19 = vpop.permute.xlu0 %386 }
  0x93   : > { %vm388_vm1 = vcmp.eq.s32.totalorder %v384_v17, %v387_v19 }
  0x94   : > { %v389_v21 = vsel %vm388_vm1, 1.0, %v1516_v20 }
  0x95   : > { %v390_v24 = vpack.c.bf16 %v389_v21, %v389_v21 }
  0x97   : > { %1226 = vmatmul.mubr.msk.bf16.vlgmr.msra.gmra.mrb[0].mxu0 %vm401_vm2, %v390_v24 }
  0x98   : > { %1030 = vmatpush1.bf16.msra.mxu0 %v1452_v22  ;;  %1061 = vmatprep.mubr.bf16.mxu0 %v282_v23 }
  0x99   : > { %1031 = vmatprep.subr.bf16.mxu0 %v1457_v25 }
  0x9c   : > { %1032 = vmatpush1.bf16.msra.mxu0 %v1455_v26  ;;  %v1326_v26 = vld [vmem:[#allocation2] ss:$0 sm:$0xff] }
  0x9d   : > { %1033 = vmatprep.subr.bf16.mxu0 %v1460_v27 }
  0xa0   : > { %1034 = vmatpush1.bf16.msra.mxu0 %v1458_v28 }
  0xa1   : > { %1035 = vmatprep.subr.bf16.mxu0 %v1463_v29 }
  0xa4   : > { %1036 = vmatpush1.bf16.msra.mxu0 %v1461_v30 }
  0xa5   : > { %1037 = vmatprep.subr.bf16.mxu0 %v1466_v31 }
  0xa8   : > { %1038 = vmatpush1.bf16.msra.mxu0 %v1464_v32 }
  0xa9   : > { %1039 = vmatprep.subr.bf16.mxu0 %v1469_v33 }
  0xac   : > { %1040 = vmatpush1.bf16.msra.mxu0 %v1467_v34 }
  0xad   : > { %1041 = vmatprep.subr.bf16.mxu0 %v1472_v35 }
  0xb0   : > { %1042 = vmatpush1.bf16.msra.mxu0 %v1470_v36 }
  0xb1   : > { %1043 = vmatprep.subr.bf16.mxu0 %v1475_v37 }
  0xb4   : > { %1044 = vmatpush1.bf16.msra.mxu0 %v1473_v38 }
  0xb5   : > { %1045 = vmatprep.subr.bf16.mxu0 %v1478_v39 }
  0xb8   : > { %1046 = vmatpush1.bf16.msra.mxu0 %v1476_v40 }
  0xb9   : > { %1047 = vmatprep.subr.bf16.mxu0 %v1481_v41 }
  0xbc   : > { %1048 = vmatpush1.bf16.msra.mxu0 %v1479_v42 }
  0xbd   : > { %1049 = vmatprep.subr.bf16.mxu0 %v1484_v43 }
  0xc0   : > { %1050 = vmatpush1.bf16.msra.mxu0 %v1482_v44 }
  0xc1   : > { %1051 = vmatprep.subr.bf16.mxu0 %v1487_v45 }
  0xc4   : > { %1052 = vmatpush1.bf16.msra.mxu0 %v1485_v46 }
  0xc5   : > { %1053 = vmatprep.subr.bf16.mxu0 %v1490_v47 }
  0xc8   : > { %1054 = vmatpush1.bf16.msra.mxu0 %v1488_v48 }
  0xc9   : > { %1055 = vmatprep.subr.bf16.mxu0 %v1493_v49 }
  0xcc   : > { %1056 = vmatpush1.bf16.msra.mxu0 %v1491_v50 }
  0xcd   : > { %1057 = vmatprep.subr.bf16.mxu0 %v1496_v51 }
  0xd0   : > { %1058 = vmatpush1.bf16.msra.mxu0 %v1494_v52 }
  0xd1   : > { %1059 = vmatprep.subr.bf16.mxu0 %v1499_v53 }
  0xd4   : > { %1060 = vmatpush1.bf16.msra.mxu0 %v1497_v54 }
  0xd5   : > { %1070 = vmatprep.subr.bf16.mxu0 %v1502_v56 }
  0xd7   : > { %1062 = vmatmul.mubr.bf16.vlgmr.msra.gmra.mrb[4].mxu0 %v281_v57 }
  0xd8   : > { %1071 = vmatpush1.bf16.msra.mxu0 %v1500_v58  ;;  %1102 = vmatprep.mubr.bf16.mxu0 %v1515_v2  ;;  %v1117_v2 = vld [vmem:[%s1904_s4] sm:$0x3] }
  0xd9   : > { %v1122_v17 = vrot.slane %v1117_v2, %v1121_v9  ;;  %v1126_v20 = vrot.slane %v1117_v2, %v1125_v10 }
  0xe3   : > { %1325 = vmatmul.mubr.msk.bf16.vlgmr.msra.gmra.mrb[4].mxu0 %vm943_vm3, %v283_v60 }
 0x15c   : > { %v1022_v61 = vpop.f32.mrb[0].mxu1 }
 0x15d   : > { %v1024_v62 = vpop.f32.mrb[1].mxu1 }
 0x15e   : > { %v1026_v63 = vpop.f32.mrb[2].mxu1 }
 0x15f   : > { %v1027_v0 = vpop.f32.mrb[3].mxu1 }
 0x16a   : > { %v446_v1 = vpop.f32.mrb[0].mxu0 }
 0x16b   : > { %v1329_v3 = vadd.f32 %v1022_v61, %v446_v1  ;;  %v448_v4 = vpop.f32.mrb[1].mxu0 }
 0x16c   : > { %v1331_v5 = vadd.f32 %v1024_v62, %v448_v4  ;;  %v450_v6 = vpop.f32.mrb[2].mxu0 }
 0x16d   : > { %v451_v7 = vpop.f32.mrb[3].mxu0 }
 0x1b6   : > { %v1104_v11 = vpop.f32.mrb[4].mxu0 }
 0x1b7   : > { %v1330_v12 = vadd.f32 %v1329_v3, %v1104_v11  ;;  %v1106_v13 = vpop.f32.mrb[5].mxu0 }
 0x1b8   : > { %v1332_v14 = vadd.f32 %v1331_v5, %v1106_v13  ;;  %v1108_v15 = vpop.f32.mrb[6].mxu0 }
 0x1b9   : > { %vm1111_vm4 = vcmp.gt.f32.partialorder %v1330_v12, 0.0  ;;  %v1113_v18 = vmul.f32 0.2, %v1330_v12  ;;  %v1109_v19 = vpop.f32.mrb[7].mxu0 }
 0x1ba   : > { %vm1112_vm5 = vcmp.gt.f32.partialorder %v1332_v14, 0.0  ;;  %v1114_v21 = vmul.f32 0.2, %v1332_v14 }
 0x1bb   : > { %v1115_v16 = vsel %vm1111_vm4, %v1330_v12, %v1113_v18 }
 0x1bc   : > { %v1116_v22 = vsel %vm1112_vm5, %v1332_v14, %v1114_v21  ;;  %v1129_v23 = vmul.f32 %v1122_v17, %v1115_v16 }
 0x1bd   : > { %v1130_v24 = vmul.f32 %v1126_v20, %v1116_v22 }
 0x1bf   : > { %v1131_v25 = vadd.f32 %v1130_v24, %v1129_v23 }
 0x1c1   : > { %1132 = vadd.xlane.f32.xlu0 %v1131_v25 }
 0x24e   : > { %v1133_v27 = vpop.xlane.xlu0 %1132 }
 0x24f   : > { %v1141_v28 = vadd.f32 %v1326_v26, %v1133_v27 }
 0x251   : > { %v1142_v29 = vsub.f32 0.0, %v1141_v28 }
 0x253   : > { %v1143_v30 = vmul.f32 1.442695, %v1142_v29 }
 0x255   : > { %1503 = vpow2.f32 %v1143_v30 }
 0x25f   : > { %v1504_v31 = vpop.eup %1503 }
 0x260   : > { %v1145_v32 = vadd.f32 1.0, %v1504_v31 }
 0x262   : > { %1505 = vrcp.f32 %v1145_v32 }
 0x26c   : > { %v1506_v33 = vpop.eup %1505 }
 0x26d   : > { %1149 = vst.msk [vmem:[%s268_s21] sm:$0xff] %vm1148_vm6, %v1506_v33 }
 0x26e PF: > { %s18_s23 = sadd.s32 1, %s1513_s23  }
 0x26f   : > { %p15_p4 = scmp.ge.s32.totalorder %s18_s23, 4  }
 0x271   :  { %17 = sbr.rel (!%p15_p4) target bundleno = 3 (0x3), region = 77 }

</bundles_post_ra>
